<compile_context>
chip_gen: v7x
topology: tpu7x:2x2x1
jax: 0.10.0
libtpu: 0.0.40
codegen_flags: <defaults>
</compile_context>

<pallas_src>
import jax
import jax.numpy as jnp
from jax.experimental import pallas as pl
from jax.experimental.pallas import tpu as pltpu


def _make_concat_kernel(channel_sizes):
    """Kernel copying each input tile into its channel slice of the output tile."""
    offsets = []
    off = 0
    for c in channel_sizes:
        offsets.append(off)
        off += c

    def kernel(*refs):
        in_refs = refs[:-1]
        out_ref = refs[-1]
        # Static (Python-level) channel offsets -> plain 2-D slice stores; the
        # lane dim is fully dense.  (Offsets that are not multiples of the
        # sublane tile only cost masked stores at slice edges; pad/group
        # channel counts upstream to 8/16/32 when feasible.)
        for x_ref, o, c in zip(in_refs, offsets, channel_sizes):
            out_ref[o:o + c, :] = x_ref[...]

    return kernel


def _vmem_budget_and_limit():
    """Per-generation VMEM budget for block buffers + explicit scoped limit."""
    cap = None
    try:
        info = pltpu.get_tpu_info()
        for name in ("vmem_capacity_bytes", "vmem_size_bytes", "vmem_bytes"):
            cap = getattr(info, name, None)
            if cap:
                break
    except Exception:
        cap = None
    if not cap:
        cap = 64 << 20  # conservative fallback: v7x per-TensorCore physical VMEM
    cap = int(cap)
    budget = min(24 << 20, cap // 3)   # v5e/v6e: 24 MiB of block buffers, v7x: ~21 MiB
    limit = min(cap // 2, max(budget + (8 << 20), 32 << 20))
    return budget, limit


def _pick_spatial_tile(hw, batch, channel_sizes, itemsize, budget_bytes,
                       min_grid_steps=8):
    """Largest multiple-of-128 lane tile whose (sublane-padded, double-buffered)
    VMEM footprint fits `budget_bytes`, capped so the grid keeps at least
    `min_grid_steps` steps (pipelining + megacore) whenever HW allows."""
    if hw <= 128:
        return hw  # full-extent last dim is always a legal block size

    sub = max(8, 32 // itemsize)  # sublane tile: 8 (f32), 16 (bf16), 32 (int8)
    pad = lambda c: -(-c // sub) * sub
    # All input buffers + the output buffer live simultaneously, x2 for
    # double buffering, each padded up to whole sublane tiles.
    padded_rows = sum(pad(c) for c in channel_sizes) + pad(sum(channel_sizes))
    bytes_per_col = 2 * padded_rows * itemsize
    max_cols = max(128, (budget_bytes // bytes_per_col) // 128 * 128)

    hw_blocks = -(-hw // 128)
    steps_wanted = -(-min_grid_steps // max(1, batch))
    step_cap_blocks = max(1, hw_blocks // steps_wanted)

    tile_blocks = max(1, min(max_cols // 128, hw_blocks, step_cap_blocks))
    tile = tile_blocks * 128
    if tile >= hw:
        return hw  # single full-extent spatial block (legal, no wasted VMEM)
    return tile


def concat_channels(xs):
    """Pallas equivalent of torch.cat(xs, dim=1) for NCHW tensors."""
    assert len(xs) >= 1, "need at least one input"
    N, _, H, W = xs[0].shape
    dtype = xs[0].dtype
    for x in xs:
        assert x.ndim == 4 and x.shape[0] == N and x.shape[2] == H and x.shape[3] == W, (
            f"all inputs must share (N, H, W); got {x.shape}")
        assert x.dtype == dtype, "all inputs must share dtype"

    c_sizes = [int(x.shape[1]) for x in xs]
    C_total = sum(c_sizes)
    HW = H * W

    # Free row-major reshape: channel concat is identical in (N, C, H*W) layout
    # and puts H*W on the lane (last) axis.
    xs2 = [x.reshape(N, c, HW) for x, c in zip(xs, c_sizes)]

    budget, vmem_limit = _vmem_budget_and_limit()
    tile = _pick_spatial_tile(HW, N, c_sizes, jnp.dtype(dtype).itemsize, budget)
    n_tiles = pl.cdiv(HW, tile)

    kernel = _make_concat_kernel(c_sizes)

    # Batch dim squeezed (None) -> kernel sees 2-D (C, tile) refs.
    in_specs = [
        pl.BlockSpec((None, c, tile), lambda n, s: (n, 0, s)) for c in c_sizes
    ]
    out_spec = pl.BlockSpec((None, C_total, tile), lambda n, s: (n, 0, s))

    out = pl.pallas_call(
        kernel,
        out_shape=jax.ShapeDtypeStruct((N, C_total, HW), dtype),
        grid=(N, n_tiles),
        in_specs=in_specs,
        out_specs=out_spec,
        compiler_params=pltpu.CompilerParams(
            dimension_semantics=("parallel", "parallel"),
            vmem_limit_bytes=vmem_limit),
    )(*xs2)

    return out.reshape(N, C_total, H, W)


if __name__ == "__main__":
    key = jax.random.PRNGKey(0)
    k1, k2, k3, k4, k5 = jax.random.split(key, 5)

    # Case 1: YOLO-style channel concat, HW a multiple of 128 (16x16 -> 256).
    x1 = jax.random.normal(k1, (2, 4, 16, 16), dtype=jnp.float32)
    x2 = jax.random.normal(k2, (2, 8, 16, 16), dtype=jnp.float32)
    x3 = jax.random.normal(k3, (2, 4, 16, 16), dtype=jnp.float32)
    out = jax.block_until_ready(concat_channels([x1, x2, x3]))
    ref = jnp.concatenate([x1, x2, x3], axis=1)
    assert out.shape == ref.shape and out.dtype == ref.dtype
    assert bool(jnp.array_equal(out, ref)), "Pallas concat mismatch (case 1)"

    # Case 2: ragged spatial extent (20x20 -> HW=400, not a multiple of 128),
    # exercising the masked partial last block, plus bf16 sublane padding.
    y1 = jax.random.normal(k4, (2, 6, 20, 20), dtype=jnp.bfloat16)
    y2 = jax.random.normal(k5, (2, 10, 20, 20), dtype=jnp.bfloat16)
    out2 = jax.block_until_ready(concat_channels([y1, y2]))
    ref2 = jnp.concatenate([y1, y2], axis=1)
    assert out2.shape == ref2.shape and out2.dtype == ref2.dtype
    assert bool(jnp.array_equal(out2, ref2)), "Pallas concat mismatch (case 2, ragged)"

    print("KERNEL_OK")
</pallas_src>

<mosaic_0001>
module attributes {stable_mosaic.version = 11 : i64} {
  func.func @kernel(%arg0: i32, %arg1: i32, %arg2: memref<1x4x128xf32, #tpu.memory_space<vmem>>, %arg3: memref<1x8x128xf32, #tpu.memory_space<vmem>>, %arg4: memref<1x4x128xf32, #tpu.memory_space<vmem>>, %arg5: memref<1x16x128xf32, #tpu.memory_space<vmem>>) attributes {dimension_semantics = [#tpu.dimension_semantics<parallel>, #tpu.dimension_semantics<parallel>], iteration_bounds = array<i64: 2, 2>, scalar_prefetch = 0 : i64, scratch_operands = 0 : i64, tpu.core_type = #tpu.core_type<tc>, window_params = [{transform_indices = @transform_0, window_bounds = array<i64: 1, 4, 128>}, {transform_indices = @transform_1, window_bounds = array<i64: 1, 8, 128>}, {transform_indices = @transform_2, window_bounds = array<i64: 1, 4, 128>}, {transform_indices = @transform_3, window_bounds = array<i64: 1, 16, 128>}]} {
    %c0 = arith.constant 0 : index
    %c0_0 = arith.constant 0 : index
    %c0_1 = arith.constant 0 : index
    %0 = vector.load %arg2[%c0, %c0_0, %c0_1] : memref<1x4x128xf32, #tpu.memory_space<vmem>>, vector<1x4x128xf32>
    %1 = vector.shape_cast %0 : vector<1x4x128xf32> to vector<4x128xf32>
    %c0_2 = arith.constant 0 : index
    %c0_3 = arith.constant 0 : index
    %c0_4 = arith.constant 0 : index
    %2 = vector.load %arg5[%c0_2, %c0_3, %c0_4] : memref<1x16x128xf32, #tpu.memory_space<vmem>>, vector<1x4x128xf32>
    %3 = vector.shape_cast %2 : vector<1x4x128xf32> to vector<4x128xf32>
    %4 = vector.shape_cast %1 : vector<4x128xf32> to vector<1x4x128xf32>
    tpu.vector_store %arg5[%c0_2, %c0_3, %c0_4], %4 {strides = array<i32>} : memref<1x16x128xf32, #tpu.memory_space<vmem>>, vector<1x4x128xf32>,
    %c0_5 = arith.constant 0 : index
    %c0_6 = arith.constant 0 : index
    %c0_7 = arith.constant 0 : index
    %5 = vector.load %arg3[%c0_5, %c0_6, %c0_7] : memref<1x8x128xf32, #tpu.memory_space<vmem>>, vector<1x8x128xf32>
    %6 = vector.shape_cast %5 : vector<1x8x128xf32> to vector<8x128xf32>
    %c0_8 = arith.constant 0 : index
    %c4 = arith.constant 4 : index
    %c0_9 = arith.constant 0 : index
    %7 = vector.load %arg5[%c0_8, %c4, %c0_9] : memref<1x16x128xf32, #tpu.memory_space<vmem>>, vector<1x8x128xf32>
    %8 = vector.shape_cast %7 : vector<1x8x128xf32> to vector<8x128xf32>
    %9 = vector.shape_cast %6 : vector<8x128xf32> to vector<1x8x128xf32>
    tpu.vector_store %arg5[%c0_8, %c4, %c0_9], %9 {strides = array<i32>} : memref<1x16x128xf32, #tpu.memory_space<vmem>>, vector<1x8x128xf32>,
    %c0_10 = arith.constant 0 : index
    %c0_11 = arith.constant 0 : index
    %c0_12 = arith.constant 0 : index
    %10 = vector.load %arg4[%c0_10, %c0_11, %c0_12] : memref<1x4x128xf32, #tpu.memory_space<vmem>>, vector<1x4x128xf32>
    %11 = vector.shape_cast %10 : vector<1x4x128xf32> to vector<4x128xf32>
    %c0_13 = arith.constant 0 : index
    %c12 = arith.constant 12 : index
    %c0_14 = arith.constant 0 : index
    %12 = vector.load %arg5[%c0_13, %c12, %c0_14] : memref<1x16x128xf32, #tpu.memory_space<vmem>>, vector<1x4x128xf32>
    %13 = vector.shape_cast %12 : vector<1x4x128xf32> to vector<4x128xf32>
    %14 = vector.shape_cast %11 : vector<4x128xf32> to vector<1x4x128xf32>
    tpu.vector_store %arg5[%c0_13, %c12, %c0_14], %14 {strides = array<i32>} : memref<1x16x128xf32, #tpu.memory_space<vmem>>, vector<1x4x128xf32>,
    return
  }
  func.func @transform_0(%arg0: i32, %arg1: i32) -> (i32, i32, i32) {
    %c0_i32 = arith.constant 0 : i32
    %c0_i32_0 = arith.constant 0 : i32
    return %arg0, %c0_i32, %arg1 : i32, i32, i32
  }
  func.func @transform_1(%arg0: i32, %arg1: i32) -> (i32, i32, i32) {
    %c0_i32 = arith.constant 0 : i32
    %c0_i32_0 = arith.constant 0 : i32
    return %arg0, %c0_i32, %arg1 : i32, i32, i32
  }
  func.func @transform_2(%arg0: i32, %arg1: i32) -> (i32, i32, i32) {
    %c0_i32 = arith.constant 0 : i32
    %c0_i32_0 = arith.constant 0 : i32
    return %arg0, %c0_i32, %arg1 : i32, i32, i32
  }
  func.func @transform_3(%arg0: i32, %arg1: i32) -> (i32, i32, i32) {
    %c0_i32 = arith.constant 0 : i32
    %c0_i32_0 = arith.constant 0 : i32
    return %arg0, %c0_i32, %arg1 : i32, i32, i32
  }
}

</mosaic_0001>

<bundles_post_ra>
// kernel: tpu_custom_call.1
= control target key start
LH: loop header
LB: loop body
LE: loop exit
PB: predicated region body
PF: predicated region fallthrough
CT: control target
= control target key end

     0   :  { %s1057_s0 = inlined_call_operand.hbm [shape: f32[2,4,256], index: 0, kind: input, shape index: {}]   ;;  %s1058_s1 = inlined_call_operand.hbm [shape: f32[2,8,256], index: 1, kind: input, shape index: {}]   ;;  %s1059_s2 = inlined_call_operand.hbm [shape: f32[2,4,256], index: 2, kind: input, shape index: {}]   ;;  %s1060_s3 = inlined_call_operand.hbm [shape: f32[2,16,256], index: 3, kind: output, shape index: {}]  }
   0x1   :  { %1070 = sst [smem:[#allocation18_spill]] %s1058_s1 }
   0x2   :  { %8 = vsyncpa [#allocation3], 0 }
   0x3   :  { %10 = vsyncpa [#allocation3 + $0x1], 0 }
   0x4   :  { %11 = vsyncpa [#allocation6], 0 }
   0x5   :  { %13 = vsyncpa [#allocation6 + $0x1], 0 }
   0x6   :  { %14 = vsyncpa [#allocation4], 0 }
   0x7   :  { %16 = vsyncpa [#allocation4 + $0x1], 0  ;;  %s774_s12 = smov 0   ;;  %s776_s13 = smov 0  }
   0x8   :  { %s778_s14 = smov 0   ;;  %s780_s15 = smov 0  }
   0x9   :  { %s782_s16 = smov 0   ;;  %s784_s17 = smov 0  }
   0xa   :  { %s786_s18 = smov 0   ;;  %s788_s19 = smov 0  }
   0xb LB: > { %1071 = sst [smem:[#allocation12_spill]] %s725_s14  ;;  %s815_s20 = sadd.s32 4294967295, %s745_s19   ;;  %s745_s19 = sphi %s788_s19, %s22_s19   ;;  %s741_s18 = sphi %s786_s18, %s1098_s18   ;;  %s737_s17 = sphi %s784_s17, %s1097_s17   ;;  %s733_s16 = sphi %s782_s16, %s1096_s16   ;;  %s729_s15 = sphi %s780_s15, %s1095_s15   ;;  %s725_s14 = sphi %s778_s14, %s1094_s14   ;;  %s721_s13 = sphi %s776_s13, %s1100_s13   ;;  %s717_s12 = sphi %s774_s12, %s1099_s12  }
   0xc   : > { %1072 = sst [smem:[#allocation13_spill]] %s737_s17  ;;  %s440_s21 = sadd.s32 4294967294, %s745_s19  }
   0xd   : > { %1073 = sst [smem:[#allocation14_spill]] %s741_s18  ;;  %s31_s22 = sadd.s32 1, %s737_s17 }
   0xe   : > { %s34_s23 = sadd.s32 1, %s741_s18  ;;  %p32_p0 = scmp.ge.s32.totalorder %s31_s22, 2 }
   0xf   : > { %s43_s24 = sadd.s32 1, %s725_s14  ;;  %p50_p1 = scmp.ne.s32.totalorder %s725_s14, %s721_s13 }
  0x10   : > { %p51_p2 = scmp.eq.s32.totalorder %s745_s19, 0  ;;  %s1102_s22 = smov (%p32_p0, %s31_s22), 0 }
  0x11   : > { %1074 = sst [smem:[#allocation15_spill]] %s1102_s22  ;;  %s1104_s23 = smov (!%p32_p0, %s34_s23), %s741_s18 }
  0x12   : > { %s39_s25 = ssub.s32 %s737_s17, %s1102_s22  ;;  %p829_p3 = por %p51_p2, %p50_p1 }
  0x13   : > { %p36_p4 = scmp.ge.s32.totalorder %s1104_s23, 2  ;;  %p56_p5 = scmp.ne.s32.totalorder %s721_s13, %s717_s12 }
  0x14   : > { %p57_p6 = scmp.eq.s32.totalorder %s815_s20, 0  ;;  %p138_p7 = scmp.eq.s32.totalorder %s815_s20, 3 }
  0x15   : > { %s1106_s23 = smov (%p36_p4, %s1104_s23), 0  ;;  %p144_p10 = scmp.eq.s32.totalorder %s440_s21, 3 }
  0x16   : > { %1076 = sst [smem:[#allocation16_spill]] %s1106_s23  ;;  %p839_p8 = por %p57_p6, %p56_p5 }
  0x17   : > { %p843_p9 = por %p138_p7, %p50_p1  ;;  %s38_s29 = ssub.s32 %s741_s18, %s1106_s23 }
  0x18   : > { %s1077_s27 = scalar_select %p839_p8, 1, 0 }
  0x19   : > { %s1078_s28 = scalar_select %p843_p9, 1, 0 }
  0x1a   : > { %s40_s30 = sor.u32 %s39_s25, %s38_s29  ;;  %p849_p12 = por %p144_p10, %p56_p5 }
  0x1b   : > { %p41_p11 = scmp.eq.s32.totalorder %s40_s30, 0  ;;  %p484_p13 = scmp.lt.s32.totalorder %s745_s19, 4 }
  0x1c   : > { %s1079_s4 = scalar_select %p849_p12, 1, 0 }
  0x1d   : > { %s855_s5 = sand.u32 1, %s725_s14   ;;  %s444_s7 = sshll.u32 %s741_s18, 1 }
  0x1e   : > { %s858_s6 = scalar_select %p41_p11, %s725_s14, %s43_s24  }
  0x1f   : > { %p863_p0 = pnand %p484_p13, %p829_p3  ;;  %s868_s9 = sadd.s32 %s737_s17, %s444_s7 }
  0x20   : > { %1080 = sst [smem:[#allocation17_spill]] %s858_s6  ;;  %s184_s10 = sand.u32 1, %s745_s19  }
  0x21   : > { %s1081_s8 = scalar_select %p863_p0, 1, 0 }
  0x22   : > { %s446_s11 = sshll.u32 %s855_s5, 3  ;;  %s448_s21 = sshll.u32 %s868_s9, 7 }
  0x23   : > { %s1082_s1 = sld [smem:[#allocation18_spill]]  ;;  %s188_s24 = scalar_lea.vmem [#allocation5], %s446_s11 }
  0x24   : > { %s197_s26 = sshll.u32 %s188_s24, 4  ;;  %s882_s7 = scalar_lea.sflag [#allocation6], %s184_s10  ;;  %s879_s26 = int_to_ptr.vmem [resolvable:$true] %s197_s26 }
  0x25   : > { %p888_p4 = pneg %p863_p0 }
  0x29   : > { %s876_s30 = scalar_lea.hbm %s1082_s1, %s448_s21  ;;  %s558_s25 = scalar_lea.hbm %s1082_s1, 512 }
  0x2a   : > { %s553_s23 = scalar_lea.hbm %s876_s30, 128  ;;  %p559_p7 = scmp.lt.u32.totalorder %s876_s30, %s1082_s1 }
  0x2b   : > { %p554_p3 = scmp.ne.s32.totalorder %s876_s30, %s553_s23  ;;  %p560_p10 = scmp.lt.u32.totalorder %s558_s25, %s553_s23 }
  0x2c   : > { %p562_p13 = scmp.lt.u32.totalorder %s553_s23, %s876_s30 }
  0x2d   : > { %p556_p5 = pnand %p888_p4, %p554_p3  ;;  %p561_p11 = por %p560_p10, %p559_p7 }
  0x2f   : > { %p557_p6 = pneg %p556_p5  ;;  %p563_p1 = por %p562_p13, %p561_p11 }
  0x31   : > { %p564_p2 = pnand %p563_p1, %p557_p6 }
  0x33   : > { %567 = shalt.err (!%p564_p2)
}
  0x34   : > { %s568_s10 = scalar_lea.vmem %s879_s26, 128  ;;  %s747_s21 = smov [#allocation5]  }
  0x35   : > { %p569_p3 = scmp.ne.s32.totalorder %s879_s26, %s568_s10  ;;  %s573_s11 = sshll.u32 %s747_s21, 4  ;;  %s574_s11 = int_to_ptr.vmem [resolvable:$false] %s573_s11 }
  0x36   : > { %s575_s29 = scalar_lea.vmem %s574_s11, 256  ;;  %p576_p9 = scmp.lt.s32.totalorder %s879_s26, %s574_s11 }
  0x37   : > { %p571_p5 = pnand %p569_p3, %p888_p4  ;;  %p577_p8 = scmp.lt.s32.totalorder %s575_s29, %s568_s10 }
  0x39   : > { %p572_p12 = pneg %p571_p5  ;;  %p578_p7 = por %p577_p8, %p576_p9 }
  0x3b   : > { %p579_p10 = pnand %p578_p7, %p572_p12 }
  0x3d   : > { %582 = shalt.err (!%p579_p10)
}
  0x3e   : > { %476 = dma.hbm_to_vmem [thread:$0]  (!%p863_p0), %s876_s30, 128, %s879_s26, %s882_s7  }
  0x3f   : > { %p1084_p1 = scmp.lt.s32.totalorder %s745_s19, 5  ;;  %p1085_p2 = scmp.ge.s32.totalorder %s745_s19, 1 }
  0x40   : > { %s1068_s25 = sshll.u32 %s855_s5, 2  ;;  %s445_s24 = sshll.u32 %s868_s9, 6 }
  0x41   : > { %p916_p6 = pnand %p1085_p2, %p1084_p1  ;;  %s925_s11 = scalar_lea.hbm %s1057_s0, %s445_s24 }
  0x42   : > { %s168_s29 = scalar_lea.vmem [#allocation2], %s1068_s25  ;;  %s934_s18 = scalar_lea.hbm %s1059_s2, %s445_s24 }
  0x43   : > { %s1086_s23 = scalar_select %p916_p6, 1, 0 }
  0x44   : > { %s177_s30 = sshll.u32 %s168_s29, 4  ;;  %s165_s9 = scalar_lea.sflag [#allocation3], %s855_s5  ;;  %s929_s30 = int_to_ptr.vmem [resolvable:$true] %s177_s30 }
  0x45   : > { %s583_s17 = scalar_lea.hbm %s925_s11, 64  ;;  %s588_s6 = scalar_lea.hbm %s1057_s0, 256 }
  0x46   : > { %p584_p8 = scmp.ne.s32.totalorder %s925_s11, %s583_s17  ;;  %p589_p11 = scmp.lt.u32.totalorder %s925_s11, %s1057_s0 }
  0x47   : > { %p590_p13 = scmp.lt.u32.totalorder %s588_s6, %s583_s17  ;;  %p592_p5 = scmp.lt.u32.totalorder %s583_s17, %s925_s11 }
  0x48   : > { %p586_p9 = pnand %p584_p8, %p888_p4 }
  0x49   : > { %p591_p3 = por %p590_p13, %p589_p11 }
  0x4a   : > { %p587_p12 = pneg %p586_p9 }
  0x4b   : > { %p593_p7 = por %p592_p5, %p591_p3 }
  0x4d   : > { %p594_p10 = pnand %p593_p7, %p587_p12 }
  0x4f   : > { %597 = shalt.err (!%p594_p10)
}
  0x50   : > { %s598_s1 = scalar_lea.vmem %s929_s30, 64  ;;  %s748_s24 = smov [#allocation2]  }
  0x51   : > { %p599_p1 = scmp.ne.s32.totalorder %s929_s30, %s598_s1  ;;  %s603_s29 = sshll.u32 %s748_s24, 4  ;;  %s604_s29 = int_to_ptr.vmem [resolvable:$false] %s603_s29 }
  0x52   : > { %s605_s14 = scalar_lea.vmem %s604_s29, 128  ;;  %p606_p9 = scmp.lt.s32.totalorder %s929_s30, %s604_s29 }
  0x53   : > { %p601_p2 = pnand %p599_p1, %p888_p4  ;;  %p607_p6 = scmp.lt.s32.totalorder %s605_s14, %s598_s1 }
  0x55   : > { %p602_p8 = pneg %p601_p2  ;;  %p608_p11 = por %p607_p6, %p606_p9 }
  0x57   : > { %p609_p13 = pnand %p608_p11, %p602_p8 }
  0x59   : > { %612 = shalt.err (!%p609_p13)
}
  0x5a   : > { %473 = dma.hbm_to_vmem [thread:$0]  (!%p863_p0), %s925_s11, 64, %s929_s30, %s165_s9  }
  0x5b   : > { %s1087_s17 = sshll.u32 %s855_s5, 2  ;;  %s613_s26 = scalar_lea.hbm %s934_s18, 64 }
  0x5c   : > { %s208_s6 = scalar_lea.vmem [#allocation7], %s1087_s17  ;;  %p614_p12 = scmp.ne.s32.totalorder %s934_s18, %s613_s26 }
  0x5d   : > { %s217_s25 = sshll.u32 %s208_s6, 4  ;;  %s618_s1 = scalar_lea.hbm %s1059_s2, 256  ;;  %s218_s25 = int_to_ptr.vmem [resolvable:$true] %s217_s25 }
  0x5e   : > { %p616_p6 = pnand %p614_p12, %p888_p4  ;;  %p619_p5 = scmp.lt.u32.totalorder %s934_s18, %s1059_s2 }
  0x5f   : > { %p620_p7 = scmp.lt.u32.totalorder %s618_s1, %s613_s26  ;;  %p622_p1 = scmp.lt.u32.totalorder %s613_s26, %s934_s18 }
  0x60   : > { %p617_p3 = pneg %p616_p6 }
  0x61   : > { %p621_p10 = por %p620_p7, %p619_p5 }
  0x63   : > { %p623_p2 = por %p622_p1, %p621_p10 }
  0x65   : > { %p624_p8 = pnand %p623_p2, %p617_p3 }
  0x67   : > { %627 = shalt.err (!%p624_p8)
}
  0x68   : > { %s628_s5 = scalar_lea.vmem %s218_s25, 64  ;;  %s749_s11 = smov [#allocation7]  }
  0x69   : > { %p629_p9 = scmp.ne.s32.totalorder %s218_s25, %s628_s5  ;;  %s633_s30 = sshll.u32 %s749_s11, 4  ;;  %s634_s30 = int_to_ptr.vmem [resolvable:$false] %s633_s30 }
  0x6a   : > { %s635_s9 = scalar_lea.vmem %s634_s30, 128  ;;  %p636_p12 = scmp.lt.s32.totalorder %s218_s25, %s634_s30 }
  0x6b   : > { %p631_p11 = pnand %p629_p9, %p888_p4  ;;  %p637_p6 = scmp.lt.s32.totalorder %s635_s9, %s628_s5 }
  0x6d   : > { %p632_p13 = pneg %p631_p11  ;;  %p638_p0 = por %p637_p6, %p636_p12 }
  0x6f   : > { %p639_p5 = pnand %p638_p0, %p632_p13 }
  0x71   : > { %642 = shalt.err (!%p639_p5)
}
  0x72   : > { %p1088_p7 = scmp.ne.s32.totalorder %s1081_s8, 0  ;;  %p1089_p3 = scmp.ne.s32.totalorder %s1086_s23, 0 }
  0x73   : > { %s981_s22 = sand.u32 (!%p1089_p3), 1, %s721_s13   ;;  %p1090_p4 = scmp.ne.s32.totalorder (!%p1089_p3), %s1077_s27, 0 }
  0x74   : > { %479 = dma.hbm_to_vmem [thread:$0]  (!%p1088_p7), %s934_s18, 64, %s218_s25, %s882_s7  }
  0x75   : > { %226 = sbr.rel (%p1089_p3) target bundleno = 158 (0x9e), region = 32  ;;  %s453_s14 = sshll.u32 (!%p1089_p3), %s981_s22, 2 }
  0x76   : > { %s229_s17 = scalar_lea.sflag (!%p1089_p3), [#allocation3], %s981_s22  ;;  %s232_s6 = scalar_lea.vmem (!%p1089_p3), [#allocation2], %s453_s14 }
  0x7c   : > { %704 = dma.done.wait (%p1090_p4), %s229_s17, 64  }
  0x7d   : > { %706 = vsyncadd (%p1090_p4), %s229_s17, 4294967232  ;;  %s237_s18 = sand.u32 1, %s815_s20   ;;  %s454_s8 = sshll.u32 %s981_s22, 3 }
  0x7e   : > { %s238_s7 = scalar_lea.sflag [#allocation6], %s237_s18  ;;  %s241_s23 = scalar_lea.vmem [#allocation5], %s454_s8 }
  0x7f   : > { %708 = dma.done.wait (%p1090_p4), %s238_s7, 192  }
  0x80   : > { %710 = vsyncadd (%p1090_p4), %s238_s7, 4294967104  ;;  %s456_s25 = sshll.u32 %s981_s22, 4  ;;  %s458_s21 = sshll.u32 %s733_s16, 2  ;;  %v283_v0 = vld [vmem:[%s232_s6] sm:$0xf]  ;;  %v285_v1 = vld [vmem:[%s241_s23] sm:$0xff] }
  0x81   : > { %s282_s26 = scalar_lea.vmem [#allocation8], %s456_s25  ;;  %s301_s1 = sadd.s32 %s729_s15, %s458_s21 }
  0x82   : > { %s304_s10 = sshll.u32 %s282_s26, 4  ;;  %s459_s20 = sshll.u32 %s301_s1, 7  ;;  %284 = vst [vmem:[%s282_s26] sm:$0xf] %v283_v0  ;;  %286 = vst [vmem:[%s282_s26 + $0x4] sm:$0xff] %v285_v1  ;;  %s998_s10 = int_to_ptr.vmem [resolvable:$true] %s304_s10 }
  0x83   : > { %s1003_s27 = scalar_lea.hbm %s1060_s3, %s459_s20  ;;  %s250_s5 = scalar_lea.vmem [#allocation7], %s453_s14 }
  0x84   : > { %v287_v2 = vld [vmem:[%s250_s5] sm:$0xf]  ;;  %s290_s16 = scalar_lea.sflag [#allocation4], %s981_s22  ;;  %s643_s15 = scalar_lea.vmem %s998_s10, 256 }
  0x85   : > { %288 = vst [vmem:[%s282_s26 + $0xc] sm:$0xf] %v287_v2  ;;  %p644_p0 = scmp.ne.s32.totalorder %s998_s10, %s643_s15  ;;  %p1091_p10 = scmp.ne.s32.totalorder %s1078_s28, 0 }
  0x86   : > { %s750_s11 = smov [#allocation8]  }
  0x87   : > { %p645_p1 = pnand %p644_p0, %p1091_p10  ;;  %s647_s30 = sshll.u32 %s750_s11, 4  ;;  %s648_s30 = int_to_ptr.vmem [resolvable:$false] %s647_s30 }
  0x88   : > { %s649_s9 = scalar_lea.vmem %s648_s30, 512  ;;  %p650_p8 = scmp.lt.s32.totalorder %s998_s10, %s648_s30 }
  0x89   : > { %p646_p2 = pneg %p645_p1  ;;  %p651_p9 = scmp.lt.s32.totalorder %s649_s9, %s643_s15 }
  0x8b   : > { %p652_p11 = por %p651_p9, %p650_p8 }
  0x8d   : > { %p653_p13 = pnand %p652_p11, %p646_p2 }
  0x8f   : > { %656 = shalt.err (!%p653_p13)
}
  0x90   : > { %s657_s14 = scalar_lea.hbm %s1003_s27, 256  ;;  %s661_s18 = scalar_lea.hbm %s1060_s3, 1024 }
  0x91   : > { %p658_p12 = scmp.ne.s32.totalorder %s1003_s27, %s657_s14  ;;  %p662_p7 = scmp.lt.u32.totalorder %s1003_s27, %s1060_s3 }
  0x92   : > { %p663_p3 = scmp.lt.u32.totalorder %s661_s18, %s657_s14  ;;  %p665_p0 = scmp.lt.u32.totalorder %s657_s14, %s1003_s27 }
  0x93   : > { %p659_p6 = pnand %p658_p12, %p1091_p10 }
  0x94   : > { %p664_p4 = por %p663_p3, %p662_p7 }
  0x95   : > { %p660_p5 = pneg %p659_p6 }
  0x96   : > { %p666_p1 = por %p665_p0, %p664_p4 }
  0x98   : > { %p667_p2 = pnand %p666_p1, %p660_p5 }
  0x9a   : > { %670 = shalt.err (!%p667_p2)
}
  0x9b   : > { %s751_s23 = smov 128   ;;  %s752_s25 = smov 256  }
  0x9c   : > { %s753_s26 = smov 8  }
  0x9d   : > { %468 = dma.vmem_to_hbm [thread:$0]  (%p1091_p10), %s998_s10, 256, %s1003_s27, %s290_s16, %s751_s23, %s752_s25, %s753_s26  }
  0x9e PF: > { %p485_p8 = scmp.ge.s32.totalorder %s745_s19, 2  ;;  %s319_s21 = sand.u32 1, %s717_s12  }
  0x9f   : > { %p1092_p9 = scmp.ne.s32.totalorder %s1079_s4, 0  ;;  %s320_s1 = scalar_lea.sflag [#allocation4], %s319_s21 }
  0xa1   : > { %p481_p11 = pnand %p485_p8, %p1092_p9 }
  0xa3   : > { %712 = dma.done.wait (!%p481_p11), %s320_s1, 256  }
  0xa4   : > { %714 = vsyncadd (!%p481_p11), %s320_s1, 4294967040  ;;  %s22_s19 = sadd.s32 1, %s745_s19   ;;  %s1093_s20 = sld [smem:[#allocation12_spill]] }
  0xa5   : > { %p19_p13 = scmp.ge.s32.totalorder %s22_s19, 6   ;;  %s1094_s14 = sld [smem:[#allocation17_spill]] }
  0xa6   : > { %s1095_s15 = sld [smem:[#allocation13_spill]]  ;;  %s1096_s16 = sld [smem:[#allocation14_spill]] }
  0xa7   : > { %s1097_s17 = sld [smem:[#allocation15_spill]]  ;;  %s1098_s18 = sld [smem:[#allocation16_spill]] }
  0xa8   : > { %s1099_s12 = smov %s721_s13  ;;  %21 = sbr.rel (!%p19_p13) target bundleno = 11 (0xb), region = 101 }
  0xaa   : > { %s1100_s13 = smov %s1093_s20 }
  0xaf   :  { %325 = vsyncpa [#allocation3], 1 }
  0xb0   :  { %327 = vsyncpa [#allocation3 + $0x1], 1 }
  0xb1   :  { %328 = vsyncpa [#allocation6], 1 }
  0xb2   :  { %330 = vsyncpa [#allocation6 + $0x1], 1 }
  0xb3   :  { %331 = vsyncpa [#allocation4], 1 }
  0xb4   :  { %333 = vsyncpa [#allocation4 + $0x1], 1 }

</bundles_post_ra>
